<compile_context>
chip_gen: v6e
topology: v6e:2x2x1
jax: 0.10.0
libtpu: 0.0.40
codegen_flags: <defaults>
</compile_context>

<pallas_src>
import math

import functools
import jax
import jax.numpy as jnp
from jax.experimental import pallas as pl
from jax.experimental.pallas import tpu as pltpu

LN_EPS = 1e-5


def _round_up(x, m):
    return (x + m - 1) // m * m


def _vmem_limit_bytes():
    """Scoped-VMEM budget derived from the chip, with ~16 MiB Mosaic headroom."""
    try:
        cap = int(pltpu.get_tpu_info().vmem_capacity_bytes)
    except Exception:
        return None  # fall back to the compiler default
    return int(min(max(cap - 16 * 1024 * 1024, 32 * 1024 * 1024),
                   128 * 1024 * 1024))


def _layernorm(x, g, b):
    # PyTorch LayerNorm (biased variance), computed in f32 like CLIP's LayerNorm wrapper.
    x32 = x.astype(jnp.float32)
    mu = jnp.mean(x32, axis=-1, keepdims=True)
    var = jnp.mean((x32 - mu) ** 2, axis=-1, keepdims=True)
    xhat = (x32 - mu) * jax.lax.rsqrt(var + LN_EPS)
    return xhat * g + b


# ---------------------------------------------------------------------------
# Kernel 1: patch embedding (conv-as-matmul) + cls token + pos embed + ln_pre
#   patch rows: [0]=cls slot (zeros), [1..N]=patches, [N+1..S-1]=pad (zeros)
# ---------------------------------------------------------------------------
def embed_kernel(patch_ref, wp_ref, cls_ref, pos_ref, g_ref, b_ref, out_ref):
    emb = jnp.dot(patch_ref[0], wp_ref[...],                         # bf16 x bf16
                  preferred_element_type=jnp.float32)                # (S, D) f32
    S, D = emb.shape
    row = jax.lax.broadcasted_iota(jnp.int32, (S, D), 0)
    x = emb + jnp.where(row == 0, cls_ref[...], jnp.float32(0.0)) + pos_ref[...]
    out_ref[0] = _layernorm(x, g_ref[...], b_ref[...]).astype(out_ref.dtype)


# ---------------------------------------------------------------------------
# Kernel 2: the full transformer tower, grid = (batch, layer)
#   residual stream lives in the resident f32 output block across the layer axis
# ---------------------------------------------------------------------------
def tower_kernel(x_ref, wqkv_ref, bqkv_ref, wo_ref, bo_ref,
                 g1_ref, b1_ref, g2_ref, b2_ref,
                 wfc_ref, bfc_ref, wpr_ref, bpr_ref,
                 out_ref, attn_sc, *, n_head, s_real):
    @pl.when(pl.program_id(1) == 0)
    def _():
        out_ref[0] = x_ref[0].astype(out_ref.dtype)   # seed residual at layer 0

    x = out_ref[0].astype(jnp.float32)                               # (S, D) f32
    S, D = x.shape
    hd = D // n_head

    # --- attention branch (pre-LN) -----------------------------------------
    h = _layernorm(x, g1_ref[0], b1_ref[0]).astype(jnp.bfloat16)
    qkv = jnp.dot(h, wqkv_ref[0],
                  preferred_element_type=jnp.float32) + bqkv_ref[0]  # (S, 3D) f32
    qkv = qkv.astype(jnp.bfloat16)      # one hoisted cast; q already pre-scaled

    key_mask = None
    if s_real < S:  # mask key columns that are sequence padding
        kcol = jax.lax.broadcasted_iota(jnp.int32, (S, S), 1)
        key_mask = kcol < s_real

    for hi in range(n_head):            # static head loop (small head count here)
        q = qkv[:, hi * hd:(hi + 1) * hd]
        k = qkv[:, D + hi * hd:D + (hi + 1) * hd]
        v = qkv[:, 2 * D + hi * hd:2 * D + (hi + 1) * hd]
        # q @ k^T via dot_general (contract last dims) — no explicit transpose
        s = jax.lax.dot_general(q, k, (((1,), (1,)), ((), ())),
                                preferred_element_type=jnp.float32)  # (S, S) f32
        if key_mask is not None:
            s = jnp.where(key_mask, s, jnp.float32(-1e30))
        s = s - jnp.max(s, axis=-1, keepdims=True)
        p = jnp.exp(s)
        p = p * pl.reciprocal(jnp.sum(p, axis=-1, keepdims=True), approx=True)
        o = jnp.dot(p.astype(jnp.bfloat16), v,
                    preferred_element_type=jnp.float32)              # (S, hd) f32
        # per-head store into the (S, D) scratch — no concat, no folded proj
        attn_sc[:, hi * hd:(hi + 1) * hd] = o.astype(jnp.bfloat16)

    # single full-depth (K = D) output projection
    attn_out = jnp.dot(attn_sc[...], wo_ref[0],
                       preferred_element_type=jnp.float32) + bo_ref[0]
    x = x + attn_out

    # --- MLP branch (pre-LN, QuickGELU) -------------------------------------
    h2 = _layernorm(x, g2_ref[0], b2_ref[0]).astype(jnp.bfloat16)
    m = jnp.dot(h2, wfc_ref[0], preferred_element_type=jnp.float32) + bfc_ref[0]
    mb = m.astype(jnp.bfloat16)
    sig = jax.nn.sigmoid(1.702 * mb)                 # bf16 EUP sigmoid (v6e/v7x)
    m = m * sig.astype(jnp.float32)                  # final multiply stays f32
    m = jnp.dot(m.astype(jnp.bfloat16), wpr_ref[0],
                preferred_element_type=jnp.float32) + bpr_ref[0]

    out_ref[0] = (x + m).astype(out_ref.dtype)


# ---------------------------------------------------------------------------
# pallas_call wrappers
# ---------------------------------------------------------------------------
def _const_spec(shape):
    zeros = (0,) * len(shape)
    return pl.BlockSpec(shape, lambda bi: zeros)     # same weight block every step


def _layer_spec(a):
    zeros = (0,) * (a.ndim - 1)
    return pl.BlockSpec((1,) + a.shape[1:], lambda b, l: (l,) + zeros)


def patch_embed_ln(patches, wp, cls_row, pos, g, b):
    B, S, CPP = patches.shape
    D = pos.shape[1]
    flops = 2 * B * S * CPP * D
    byts = int(patches.size * 2 + wp.size * 2 + pos.size * 4 + cls_row.size * 4
               + g.size * 4 + b.size * 4 + B * S * D * 4)
    return pl.pallas_call(
        embed_kernel,
        out_shape=jax.ShapeDtypeStruct((B, S, D), jnp.float32),
        grid=(B,),
        in_specs=[
            pl.BlockSpec((1, S, CPP), lambda bi: (bi, 0, 0)),
            _const_spec(wp.shape),
            _const_spec(cls_row.shape),
            _const_spec(pos.shape),
            _const_spec(g.shape),
            _const_spec(b.shape),
        ],
        out_specs=pl.BlockSpec((1, S, D), lambda bi: (bi, 0, 0)),
        compiler_params=pltpu.CompilerParams(
            dimension_semantics=("parallel",),
            vmem_limit_bytes=_vmem_limit_bytes()),
        cost_estimate=pl.CostEstimate(flops=int(flops), transcendentals=int(B * S),
                                      bytes_accessed=byts),
    )(patches, wp, cls_row, pos, g, b)


def transformer_tower(x, stacked, n_head, s_real):
    B, S, D = x.shape
    names = ("wqkv", "bqkv", "wo", "bo", "g1", "b1", "g2", "b2",
             "wfc", "bfc", "wpr", "bpr")
    ws = [stacked[n] for n in names]
    L = ws[0].shape[0]

    in_specs = [pl.BlockSpec((1, S, D), lambda b, l: (b, 0, 0))]
    in_specs += [_layer_spec(a) for a in ws]

    flops = 2 * B * L * S * D * (12 * D + 2 * S)
    transcend = B * L * (n_head * S * S + 4 * S * D + 2 * S)
    w_bytes = sum(int(a.size) * a.dtype.itemsize for a in ws)
    byts = int(B * w_bytes + 2 * B * S * D * 4)

    return pl.pallas_call(
        functools.partial(tower_kernel, n_head=n_head, s_real=s_real),
        out_shape=jax.ShapeDtypeStruct((B, S, D), jnp.float32),
        grid=(B, L),
        in_specs=in_specs,
        out_specs=pl.BlockSpec((1, S, D), lambda b, l: (b, 0, 0)),
        scratch_shapes=[pltpu.VMEM((S, D), jnp.bfloat16)],
        compiler_params=pltpu.CompilerParams(
            dimension_semantics=("parallel", "arbitrary"),
            vmem_limit_bytes=_vmem_limit_bytes()),
        cost_estimate=pl.CostEstimate(flops=int(flops), transcendentals=int(transcend),
                                      bytes_accessed=byts),
    )(x, *ws)


# ---------------------------------------------------------------------------
# Parameter construction (deterministic, mirrors CLIP / VisionTransformer init)
# ---------------------------------------------------------------------------
def init_clip_visual_params(key, *, image_resolution, patch_size, width, layers, heads):
    n_patches = (image_resolution // patch_size) ** 2
    seq = n_patches + 1
    scale = width ** (-0.5)
    proj_std = width ** (-0.5) * (2 * layers) ** (-0.5)
    attn_std = width ** (-0.5)
    fc_std = (2 * width) ** (-0.5)
    hd = width // heads
    qscale = 1.0 / math.sqrt(hd)

    keys = jax.random.split(key, 3 + 4 * layers)
    conv_w = attn_std * jax.random.normal(
        keys[0], (width, 3, patch_size, patch_size), jnp.float32)

    wqkv, bqkv, wo, bo = [], [], [], []
    g1, b1, g2, b2 = [], [], [], []
    wfc, bfc, wpr, bpr = [], [], [], []
    for l in range(layers):
        kq, ko, kf, kp = keys[3 + 4 * l:7 + 4 * l]
        in_proj_w = attn_std * jax.random.normal(kq, (3 * width, width), jnp.float32)
        out_proj_w = proj_std * jax.random.normal(ko, (width, width), jnp.float32)
        c_fc_w = fc_std * jax.random.normal(kf, (4 * width, width), jnp.float32)
        c_proj_w = proj_std * jax.random.normal(kp, (width, 4 * width), jnp.float32)

        w = in_proj_w.T                                   # (D, 3D)
        w = w.at[:, :width].multiply(qscale)              # fold 1/sqrt(hd) into q cols
        bq = jnp.zeros((1, 3 * width), jnp.float32)       # q-part scale fold is a no-op (zeros)

        wqkv.append(w.astype(jnp.bfloat16));      bqkv.append(bq)
        wo.append(out_proj_w.T.astype(jnp.bfloat16))
        bo.append(jnp.zeros((1, width), jnp.float32))
        g1.append(jnp.ones((1, width), jnp.float32)); b1.append(jnp.zeros((1, width), jnp.float32))
        g2.append(jnp.ones((1, width), jnp.float32)); b2.append(jnp.zeros((1, width), jnp.float32))
        wfc.append(c_fc_w.T.astype(jnp.bfloat16))
        bfc.append(jnp.zeros((1, 4 * width), jnp.float32))
        wpr.append(c_proj_w.T.astype(jnp.bfloat16))
        bpr.append(jnp.zeros((1, width), jnp.float32))

    stacked = {
        "wqkv": jnp.stack(wqkv), "bqkv": jnp.stack(bqkv),
        "wo": jnp.stack(wo), "bo": jnp.stack(bo),
        "g1": jnp.stack(g1), "b1": jnp.stack(b1),
        "g2": jnp.stack(g2), "b2": jnp.stack(b2),
        "wfc": jnp.stack(wfc), "bfc": jnp.stack(bfc),
        "wpr": jnp.stack(wpr), "bpr": jnp.stack(bpr),
    }
    return {
        # conv-as-matmul weight (flatten order c, ph, pw), stored bf16 for the MXU
        "wp": conv_w.reshape(width, -1).T.astype(jnp.bfloat16),       # (C*P*P, D)
        "cls": scale * jax.random.normal(keys[1], (1, width), jnp.float32),
        "pos": scale * jax.random.normal(keys[2], (seq, width), jnp.float32),
        "ln_pre_g": jnp.ones((1, width), jnp.float32),
        "ln_pre_b": jnp.zeros((1, width), jnp.float32),
        "stacked": stacked,
    }


# ---------------------------------------------------------------------------
# Full forward: CLIP.forward(image) -> visual features (B, N_patches+1, width)
# ---------------------------------------------------------------------------
def clip_forward(image, params, *, patch_size, heads):
    B, C, H, W = image.shape
    P = patch_size
    Hp, Wp = H // P, W // P
    N = Hp * Wp
    D = params["pos"].shape[1]

    # patchify (JAX glue): (B,C,H,W) -> (B, N, C*P*P) with (c, ph, pw) flattening
    patches = image.reshape(B, C, Hp, P, Wp, P)
    patches = patches.transpose(0, 2, 4, 1, 3, 5).reshape(B, N, C * P * P)

    s_real = N + 1
    s_pad = max(_round_up(s_real, 16), 16)   # bf16-sublane-aligned sequence length

    # shift patches into rows 1..N (row 0 = cls slot, trailing rows = pad); bf16 DMA
    patches_pad = jnp.zeros((B, s_pad, C * P * P), jnp.bfloat16)
    patches_pad = patches_pad.at[:, 1:s_real, :].set(patches.astype(jnp.bfloat16))
    pos_pad = jnp.zeros((s_pad, D), jnp.float32).at[:s_real, :].set(params["pos"])

    x = patch_embed_ln(patches_pad, params["wp"], params["cls"], pos_pad,
                       params["ln_pre_g"], params["ln_pre_b"])        # (B, s_pad, D) f32
    x = transformer_tower(x, params["stacked"], heads, s_real)        # fused L layers
    return x[:, :s_real, :]                                           # (B, N+1, D)


if __name__ == "__main__":
    # Small synthetic config consistent with the module:
    #   image_resolution=16, patch_size=8 -> 4 patches, seq=5 (padded to 16 internally)
    #   vision_width=128 -> vision_heads = 128 // 64 = 2, vision_layers=2
    image_resolution = 16
    patch_size = 8
    vision_width = 128
    vision_layers = 2
    vision_heads = vision_width // 64
    B = 2

    key = jax.random.PRNGKey(0)
    k_img, k_par = jax.random.split(key)
    image = jax.random.normal(k_img, (B, 3, image_resolution, image_resolution), jnp.float32)

    params = init_clip_visual_params(
        k_par,
        image_resolution=image_resolution,
        patch_size=patch_size,
        width=vision_width,
        layers=vision_layers,
        heads=vision_heads,
    )

    out = clip_forward(image, params, patch_size=patch_size, heads=vision_heads)
    out = jax.block_until_ready(out)
    assert out.shape == (B, (image_resolution // patch_size) ** 2 + 1, vision_width)
    assert bool(jnp.all(jnp.isfinite(out)))
    print("KERNEL_OK")
</pallas_src>

<mosaic_0001>
module attributes {stable_mosaic.version = 11 : i64} {
  func.func @embed_kernel(%arg0: i32, %arg1: memref<1x16x192xbf16, #tpu.memory_space<vmem>>, %arg2: memref<192x128xbf16, #tpu.memory_space<vmem>>, %arg3: memref<1x128xf32, #tpu.memory_space<vmem>>, %arg4: memref<16x128xf32, #tpu.memory_space<vmem>>, %arg5: memref<1x128xf32, #tpu.memory_space<vmem>>, %arg6: memref<1x128xf32, #tpu.memory_space<vmem>>, %arg7: memref<1x16x128xf32, #tpu.memory_space<vmem>>) attributes {dimension_semantics = [#tpu.dimension_semantics<parallel>], iteration_bounds = array<i64: 2>, scalar_prefetch = 0 : i64, scratch_operands = 0 : i64, tpu.core_type = #tpu.core_type<tc>, window_params = [{transform_indices = @transform_0, window_bounds = array<i64: 1, 16, 192>}, {pipeline_mode = #tpu.pipeline_mode<synchronous>, transform_indices = @transform_1, window_bounds = array<i64: 192, 128>}, {pipeline_mode = #tpu.pipeline_mode<synchronous>, transform_indices = @transform_2, window_bounds = array<i64: 1, 128>}, {pipeline_mode = #tpu.pipeline_mode<synchronous>, transform_indices = @transform_3, window_bounds = array<i64: 16, 128>}, {pipeline_mode = #tpu.pipeline_mode<synchronous>, transform_indices = @transform_4, window_bounds = array<i64: 1, 128>}, {pipeline_mode = #tpu.pipeline_mode<synchronous>, transform_indices = @transform_5, window_bounds = array<i64: 1, 128>}, {transform_indices = @transform_6, window_bounds = array<i64: 1, 16, 128>}]} {
    %c0 = arith.constant 0 : index
    %c0_0 = arith.constant 0 : index
    %c0_1 = arith.constant 0 : index
    %0 = vector.load %arg1[%c0, %c0_0, %c0_1] : memref<1x16x192xbf16, #tpu.memory_space<vmem>>, vector<1x16x192xbf16>
    %1 = vector.shape_cast %0 : vector<1x16x192xbf16> to vector<16x192xbf16>
    %c0_2 = arith.constant 0 : index
    %c0_3 = arith.constant 0 : index
    %2 = vector.load %arg2[%c0_2, %c0_3] : memref<192x128xbf16, #tpu.memory_space<vmem>>, vector<192x128xbf16>
    %cst = arith.constant dense<0.000000e+00> : vector<16x128xf32>
    %3 = tpu.matmul %1, %2, %cst {dimension_numbers = #tpu.dot_dimension_numbers<[1], [0], [0], [1], [0, 0, 1, 1], [], []>} : vector<16x192xbf16>, vector<192x128xbf16>, vector<16x128xf32> -> vector<16x128xf32>
    %4 = tpu.iota {dimensions = array<i32: 0>} : vector<16x128xi32>
    %c0_i32 = arith.constant 0 : i32
    %5 = vector.broadcast %c0_i32 : i32 to vector<16x128xi32>
    %6 = arith.cmpi eq, %4, %5 : vector<16x128xi32>
    %c0_4 = arith.constant 0 : index
    %c0_5 = arith.constant 0 : index
    %7 = vector.load %arg3[%c0_4, %c0_5] : memref<1x128xf32, #tpu.memory_space<vmem>>, vector<1x128xf32>
    %cst_6 = arith.constant 0.000000e+00 : f32
    %8 = vector.shape_cast %7 : vector<1x128xf32> to vector<1x128xf32>
    %9 = vector.broadcast %8 : vector<1x128xf32> to vector<16x128xf32>
    %10 = vector.broadcast %cst_6 : f32 to vector<16x128xf32>
    %11 = arith.select %6, %9, %10 : vector<16x128xi1>, vector<16x128xf32>
    %12 = arith.addf %3, %11 : vector<16x128xf32>
    %c0_7 = arith.constant 0 : index
    %c0_8 = arith.constant 0 : index
    %13 = vector.load %arg4[%c0_7, %c0_8] : memref<16x128xf32, #tpu.memory_space<vmem>>, vector<16x128xf32>
    %14 = arith.addf %12, %13 : vector<16x128xf32>
    %c0_9 = arith.constant 0 : index
    %c0_10 = arith.constant 0 : index
    %15 = vector.load %arg5[%c0_9, %c0_10] : memref<1x128xf32, #tpu.memory_space<vmem>>, vector<1x128xf32>
    %c0_11 = arith.constant 0 : index
    %c0_12 = arith.constant 0 : index
    %16 = vector.load %arg6[%c0_11, %c0_12] : memref<1x128xf32, #tpu.memory_space<vmem>>, vector<1x128xf32>
    %cst_13 = arith.constant dense<0.000000e+00> : vector<16xf32>
    %17 = vector.multi_reduction <add>, %14, %cst_13 [1] : vector<16x128xf32> to vector<16xf32>
    %18 = vector.shape_cast %17 : vector<16xf32> to vector<16x1xf32>
    %cst_14 = arith.constant 1.280000e+02 : f32
    %19 = vector.broadcast %cst_14 : f32 to vector<16x1xf32>
    %20 = arith.divf %18, %19 : vector<16x1xf32>
    %21 = vector.broadcast %20 : vector<16x1xf32> to vector<16x128xf32>
    %22 = arith.subf %14, %21 : vector<16x128xf32>
    %23 = arith.mulf %22, %22 : vector<16x128xf32>
    %cst_15 = arith.constant dense<0.000000e+00> : vector<16xf32>
    %24 = vector.multi_reduction <add>, %23, %cst_15 [1] : vector<16x128xf32> to vector<16xf32>
    %25 = vector.shape_cast %24 : vector<16xf32> to vector<16x1xf32>
    %cst_16 = arith.constant 1.280000e+02 : f32
    %26 = vector.broadcast %cst_16 : f32 to vector<16x1xf32>
    %27 = arith.divf %25, %26 : vector<16x1xf32>
    %28 = vector.broadcast %20 : vector<16x1xf32> to vector<16x128xf32>
    %29 = arith.subf %14, %28 : vector<16x128xf32>
    %cst_17 = arith.constant 9.99999974E-6 : f32
    %30 = vector.broadcast %cst_17 : f32 to vector<16x1xf32>
    %31 = arith.addf %27, %30 : vector<16x1xf32>
    %32 = math.rsqrt %31 : vector<16x1xf32>
    %33 = vector.broadcast %32 : vector<16x1xf32> to vector<16x128xf32>
    %34 = arith.mulf %29, %33 : vector<16x128xf32>
    %35 = vector.broadcast %15 : vector<1x128xf32> to vector<16x128xf32>
    %36 = arith.mulf %34, %35 : vector<16x128xf32>
    %37 = vector.broadcast %16 : vector<1x128xf32> to vector<16x128xf32>
    %38 = arith.addf %36, %37 : vector<16x128xf32>
    %c0_18 = arith.constant 0 : index
    %c0_19 = arith.constant 0 : index
    %c0_20 = arith.constant 0 : index
    %39 = vector.load %arg7[%c0_18, %c0_19, %c0_20] : memref<1x16x128xf32, #tpu.memory_space<vmem>>, vector<1x16x128xf32>
    %40 = vector.shape_cast %39 : vector<1x16x128xf32> to vector<16x128xf32>
    %41 = vector.shape_cast %38 : vector<16x128xf32> to vector<1x16x128xf32>
    tpu.vector_store %arg7[%c0_18, %c0_19, %c0_20], %41 {strides = array<i32>} : memref<1x16x128xf32, #tpu.memory_space<vmem>>, vector<1x16x128xf32>,
    return
  }
  func.func @transform_0(%arg0: i32) -> (i32, i32, i32) {
    %c0_i32 = arith.constant 0 : i32
    %c0_i32_0 = arith.constant 0 : i32
    %c0_i32_1 = arith.constant 0 : i32
    return %arg0, %c0_i32, %c0_i32_0 : i32, i32, i32
  }
  func.func @transform_1(%arg0: i32) -> (i32, i32) {
    %c0_i32 = arith.constant 0 : i32
    %c0_i32_0 = arith.constant 0 : i32
    %c0_i32_1 = arith.constant 0 : i32
    return %c0_i32, %c0_i32_0 : i32, i32
  }
  func.func @transform_2(%arg0: i32) -> (i32, i32) {
    %c0_i32 = arith.constant 0 : i32
    %c0_i32_0 = arith.constant 0 : i32
    %c0_i32_1 = arith.constant 0 : i32
    return %c0_i32, %c0_i32_0 : i32, i32
  }
  func.func @transform_3(%arg0: i32) -> (i32, i32) {
    %c0_i32 = arith.constant 0 : i32
    %c0_i32_0 = arith.constant 0 : i32
    %c0_i32_1 = arith.constant 0 : i32
    return %c0_i32, %c0_i32_0 : i32, i32
  }
  func.func @transform_4(%arg0: i32) -> (i32, i32) {
    %c0_i32 = arith.constant 0 : i32
    %c0_i32_0 = arith.constant 0 : i32
    %c0_i32_1 = arith.constant 0 : i32
    return %c0_i32, %c0_i32_0 : i32, i32
  }
  func.func @transform_5(%arg0: i32) -> (i32, i32) {
    %c0_i32 = arith.constant 0 : i32
    %c0_i32_0 = arith.constant 0 : i32
    %c0_i32_1 = arith.constant 0 : i32
    return %c0_i32, %c0_i32_0 : i32, i32
  }
  func.func @transform_6(%arg0: i32) -> (i32, i32, i32) {
    %c0_i32 = arith.constant 0 : i32
    %c0_i32_0 = arith.constant 0 : i32
    %c0_i32_1 = arith.constant 0 : i32
    return %arg0, %c0_i32, %c0_i32_0 : i32, i32, i32
  }
}

</mosaic_0001>

<bundles_post_ra>
// kernel: tpu_custom_call.1
= control target key start
LH: loop header
LB: loop body
LE: loop exit
PB: predicated region body
PF: predicated region fallthrough
CT: control target
= control target key end

     0   :  { %11 = vsyncpa [#allocation3], 0  ;;  %s1157_s0 = inlined_call_operand.hbm [shape: bf16[2,16,192], index: 0, kind: input, shape index: {}]   ;;  %s1158_s1 = inlined_call_operand.hbm [shape: bf16[192,128], index: 1, kind: input, shape index: {}]   ;;  %s1159_s2 = inlined_call_operand.vmem [shape: f32[1,128], index: 2, kind: input, shape index: {}]   ;;  %s1160_s3 = inlined_call_operand.hbm [shape: f32[16,128], index: 3, kind: input, shape index: {}]   ;;  %s1161_s4 = inlined_call_operand.vmem [shape: f32[1,128], index: 4, kind: input, shape index: {}]   ;;  %s1162_s5 = inlined_call_operand.vmem [shape: f32[1,128], index: 5, kind: input, shape index: {}]   ;;  %s1163_s6 = inlined_call_operand.hbm [shape: f32[2,16,128], index: 6, kind: output, shape index: {}]  }
   0x1   :  { %13 = vsyncpa [#allocation3 + $0x1], 0 }
   0x2   :  { %14 = vsyncpa [#allocation6], 0 }
   0x3   :  { %15 = vsyncpa [#allocation4], 0 }
   0x4   :  { %17 = vsyncpa [#allocation4 + $0x1], 0  ;;  %s946_s21 = smov 0   ;;  %s948_s22 = smov 0  }
   0x5   :  { %s950_s23 = smov 0   ;;  %s952_s24 = smov 0  }
   0x6 LB: > { %s967_s25 = sadd.s32 4294967295, %s898_s24   ;;  %s619_s26 = sadd.s32 4294967294, %s898_s24   ;;  %s898_s24 = sphi %s952_s24, %s1189_s24   ;;  %s894_s23 = sphi %s950_s23, %s1188_s23   ;;  %s890_s22 = sphi %s948_s22, %s1187_s22   ;;  %s886_s21 = sphi %s946_s21, %s1186_s21  }
   0x7   : > { %p43_p0 = scmp.ne.s32.totalorder %s890_s22, %s886_s21  ;;  %p1164_p1 = scmp.eq.s32.totalorder %s967_s25, 0 }
   0x8   : > { %p178_p3 = scmp.eq.s32.totalorder %s619_s26, 1  ;;  %p620_p5 = scmp.ge.s32.totalorder %s898_s24, 1 }
   0x9   : > { %p976_p4 = por %p1164_p1, %p43_p0  ;;  %p185_p7 = scmp.lt.s32.totalorder %s898_s24, 3 }
   0xa   : > { %p981_p6 = por %p178_p3, %p43_p0  ;;  %s900_s30 = smov [#allocation5]  }
   0xb   : > { %s1170_s27 = scalar_select %p976_p4, 1, 0 }
   0xc   : > { %s1171_s28 = scalar_select %p981_p6, 1, 0 }
   0xd   : > { %p986_p8 = pnand %p620_p5, %p185_p7  ;;  %s197_s7 = sshll.u32 %s900_s30, 4  ;;  %s198_s7 = int_to_ptr.vmem [resolvable:$true] %s197_s7 }
   0xe   : > { %s901_s9 = smov [#allocation7]   ;;  %s761_s11 = scalar_lea.vmem %s198_s7, 1536 }
   0xf   : > { %s1172_s29 = scalar_select %p986_p8, 1, 0 }
  0x10   : > { %p669_p9 = pneg %p986_p8  ;;  %s213_s10 = sshll.u32 %s901_s9, 4  ;;  %s214_s10 = int_to_ptr.vmem [resolvable:$true] %s213_s10 }
  0x11   : > { %p762_p13 = scmp.ne.s32.totalorder %s198_s7, %s761_s11  ;;  %p769_p5 = scmp.lt.s32.totalorder %s198_s7, %s198_s7 }
  0x12   : > { %p995_p11 = pnand %p669_p9, %p1164_p1  ;;  %p770_p7 = scmp.lt.s32.totalorder %s761_s11, %s761_s11 }
  0x14   : > { %p752_p12 = pneg %p995_p11  ;;  %p771_p10 = por %p770_p7, %p769_p5 }
  0x16   : > { %p764_p0 = pnand %p762_p13, %p752_p12 }
  0x18   : > { %p765_p3 = pneg %p764_p0 }
  0x1a   : > { %p772_p9 = pnand %p771_p10, %p765_p3 }
  0x1c   : > { %775 = shalt.err (!%p772_p9)
}
  0x1d   : > { %s902_s12 = smov 64   ;;  %s903_s13 = smov 4  }
  0x1e   : > { %672 = dma.hbm_to_vmem [thread:$0]  (!%p995_p11), %s1158_s1, 1536, %s198_s7, [#allocation6], %s902_s12, %s902_s12, %s903_s13  }
  0x1f   : > { %s787_s16 = scalar_lea.vmem %s214_s10, 256  ;;  %p795_p2 = scmp.lt.s32.totalorder %s214_s10, %s214_s10 }
  0x20   : > { %p788_p1 = scmp.ne.s32.totalorder %s214_s10, %s787_s16  ;;  %p796_p6 = scmp.lt.s32.totalorder %s787_s16, %s787_s16 }
  0x22   : > { %p790_p13 = pnand %p788_p1, %p752_p12  ;;  %p797_p5 = por %p796_p6, %p795_p2 }
  0x24   : > { %p791_p0 = pneg %p790_p13 }
  0x26   : > { %p798_p10 = pnand %p797_p5, %p791_p0 }
  0x28   : > { %801 = shalt.err (!%p798_p10)
}
  0x29   : > { %s1165_s17 = smov 128   ;;  %s1166_s18 = smov 8  }
  0x2a   : > { %675 = dma.hbm_to_vmem [thread:$0]  (!%p995_p11), %s1160_s3, 256, %s214_s10, [#allocation6], %s1165_s17, %s1165_s17, %s1166_s18  }
  0x2b   : > { %s1021_s26 = sadd.s32 1, %s898_s24   ;;  %s30_s7 = sadd.s32 1, %s894_s23 }
  0x2c   : > { %s27_s30 = ssub.s32 %s898_s24, %s1021_s26  ;;  %p37_p2 = scmp.ne.s32.totalorder %s894_s23, %s890_s22 }
  0x2d   : > { %p28_p1 = scmp.eq.s32.totalorder %s27_s30, 0  ;;  %p38_p6 = scmp.eq.s32.totalorder %s898_s24, 0 }
  0x2e   : > { %p1174_p3 = scmp.eq.s32.totalorder %s967_s25, 1  ;;  %p686_p9 = scmp.lt.s32.totalorder %s898_s24, 2 }
  0x2f   : > { %s1030_s9 = scalar_select %p28_p1, %s894_s23, %s30_s7  }
  0x30   : > { %p39_p12 = por %p38_p6, %p37_p2  ;;  %p1034_p7 = por %p1174_p3, %p37_p2 }
  0x31   : > { %s233_s11 = sand.u32 1, %s894_s23   ;;  %s655_s10 = sshll.u32 %s898_s24, 8 }
  0x32   : > { %s1175_s8 = scalar_select %p1034_p7, 1, 0 }
  0x33   : > { %s624_s12 = sshll.u32 %s233_s11, 4  ;;  %s1044_s15 = scalar_lea.hbm %s1157_s0, %s655_s10 }
  0x34   : > { %s237_s16 = scalar_lea.vmem [#allocation2], %s624_s12  ;;  %p1048_p11 = pnand %p686_p9, %p39_p12 }
  0x35   : > { %s244_s19 = sshll.u32 %s237_s16, 4  ;;  %s1052_s30 = scalar_lea.sflag [#allocation3], %s233_s11  ;;  %s1046_s19 = int_to_ptr.vmem [resolvable:$true] %s244_s19 }
  0x36   : > { %s802_s7 = scalar_lea.hbm %s1044_s15, 256  ;;  %p804_p0 = pneg %p1048_p11 }
  0x37   : > { %p803_p13 = scmp.ne.s32.totalorder %s1044_s15, %s802_s7  ;;  %s807_s12 = scalar_lea.hbm %s1157_s0, 512 }
  0x38   : > { %p808_p1 = scmp.lt.s32.totalorder %s1044_s15, %s1157_s0  ;;  %p809_p2 = scmp.lt.s32.totalorder %s807_s12, %s802_s7 }
  0x39   : > { %p805_p5 = pnand %p804_p0, %p803_p13 }
  0x3a   : > { %p810_p6 = por %p809_p2, %p808_p1 }
  0x3b   : > { %p806_p10 = pneg %p805_p5 }
  0x3d   : > { %p811_p12 = pnand %p810_p6, %p806_p10 }
  0x3f   : > { %814 = shalt.err (!%p811_p12)
}
  0x40   : > { %s815_s11 = scalar_lea.vmem %s1046_s19, 256  ;;  %s906_s17 = smov [#allocation2]  }
  0x41   : > { %p816_p3 = scmp.ne.s32.totalorder %s1046_s19, %s815_s11  ;;  %s820_s18 = sshll.u32 %s906_s17, 4  ;;  %s821_s18 = int_to_ptr.vmem [resolvable:$false] %s820_s18 }
  0x42   : > { %s822_s10 = scalar_lea.vmem %s821_s18, 512  ;;  %p823_p5 = scmp.lt.s32.totalorder %s1046_s19, %s821_s18 }
  0x43   : > { %p818_p9 = pnand %p816_p3, %p804_p0  ;;  %p824_p7 = scmp.lt.s32.totalorder %s822_s10, %s815_s11 }
  0x45   : > { %p819_p13 = pneg %p818_p9  ;;  %p825_p4 = por %p824_p7, %p823_p5 }
  0x47   : > { %p826_p8 = pnand %p825_p4, %p819_p13 }
  0x49   : > { %829 = shalt.err (!%p826_p8)
}
  0x4a   : > { %s1177_s7 = smov 8   ;;  %s1178_s13 = smov 128  }
  0x4b   : > { %679 = dma.hbm_to_vmem [thread:$0]  (!%p1048_p11), %s1044_s15, 256, %s1046_s19, %s1052_s30, %s1178_s13, %s1178_s13, %s1177_s7  }
  0x4c   : > { %p1179_p0 = scmp.ne.s32.totalorder %s1172_s29, 0 }
  0x4d   : > { %s1079_s17 = sand.u32 (!%p1179_p0), 1, %s890_s22   ;;  %p1180_p4 = scmp.ne.s32.totalorder (!%p1179_p0), %s1170_s27, 0 }
  0x4e   : > { %256 = sbr.rel (%p1179_p0) target bundleno = 657 (0x291), region = 44  ;;  %s628_s18 = sshll.u32 (!%p1179_p0), %s1079_s17, 4 }
  0x4f   : > { %s259_s12 = scalar_lea.sflag (!%p1179_p0), [#allocation3], %s1079_s17  ;;  %s1085_s20 = scalar_lea.vmem (!%p1179_p0), [#allocation2], %s628_s18 }
  0x53   : > { %873 = dma.done.wait (%p1180_p4), %s259_s12, 256  }
  0x54   : > { %875 = vsyncadd (%p1180_p4), %s259_s12, 4294967040  ;;  %p1181_p8 = scmp.eq.s32.totalorder %s967_s25, 0 }
  0x56   : > { %877 = dma.done.wait (%p1181_p8), [#allocation6], 1792   ;;  %p1182_p7 = pmov %p1181_p8 }
  0x57   : > { %v907_v0 = vmov 0   ;;  %v731_v1 = vld [vmem:[#allocation5 + $0x38] sm:$0xff]   ;;  %v732_v2 = vld [vmem:[#allocation5 + $0x30] sm:$0xff]   ;;  %v733_v3 = vld [vmem:[#allocation5 + $0x28] sm:$0xff]   ;;  %vm421_vm0 = vcmask 523264   ;;  %v326_v15 = vlaneseq  ;;  %s656_s16 = sshll.u32 %s967_s25, 8 }
  0x58   : > { %879 = vsyncadd (%p1182_p7), [#allocation6], 4294965504  ;;  %425 = vmatprep.subr.bf16.mxu0 %v907_v0  ;;  %v734_v4 = vld [vmem:[#allocation5 + $0x20] sm:$0xff]   ;;  %v735_v6 = vld [vmem:[#allocation5 + $0x18] sm:$0xff]   ;;  %s298_s11 = scalar_lea.vmem [#allocation8], %s628_s18  ;;  %s1112_s12 = scalar_lea.hbm %s1163_s6, %s656_s16 }
  0x59   : > { %426 = vmatpush1.bf16.msra.mxu0 %v731_v1  ;;  %v745_v5 = vld [vmem:[%s1085_s20 + $0x4] ss:$8 sps:$4 sm:$0xff]   ;;  %v743_v14 = vld [vmem:[%s1085_s20] ss:$8 sps:$4 sm:$0xff]   ;;  %v327_v16 = vshrl.u32 %v326_v15, 7  ;;  %s527_s10 = sshll.u32 %s298_s11, 4  ;;  %s1114_s10 = int_to_ptr.vmem [resolvable:$true] %s527_s10 }
  0x5a   : > { %427 = vmatprep.subr.bf16.mxu0 %v907_v0  ;;  %647 = vmatprep.mubr.msk.bf16.mxu0 %vm421_vm0, %v745_v5  ;;  %v736_v7 = vld [vmem:[#allocation5 + $0x10] sm:$0xff]   ;;  %v737_v8 = vld [vmem:[#allocation5 + $0x8] sm:$0xff]   ;;  %v738_v9 = vld [vmem:[#allocation5] sm:$0xff]   ;;  %s514_s20 = scalar_lea.sflag [#allocation4], %s1079_s17  ;;  %s830_s27 = scalar_lea.vmem %s1114_s10, 256 }
  0x5b   : > { %v739_v10 = vld [vmem:[#allocation5 + $0x58] sm:$0xff]   ;;  %v740_v11 = vld [vmem:[#allocation5 + $0x50] sm:$0xff]   ;;  %v741_v12 = vld [vmem:[#allocation5 + $0x48] sm:$0xff]   ;;  %vm329_vm1 = vcmp.eq.s32.totalorder %v327_v16, 0  ;;  %p831_p11 = scmp.ne.s32.totalorder %s1114_s10, %s830_s27  ;;  %p1183_p10 = scmp.ne.s32.totalorder %s1175_s8, 0 }
  0x5c   : > { %v742_v13 = vld [vmem:[#allocation5 + $0x40] sm:$0xff]   ;;  %v467_v25 = vld [vmem:[#allocation7 + $0x8] sm:$0xff]  ;;  %s908_s25 = smov [#allocation8]  }
  0x5d   : > { %428 = vmatpush1.bf16.msra.mxu0 %v732_v2  ;;  %v632_v17 = vld [vmem:[%s1159_s2] ss:$0 sm:$0xff]  ;;  %p832_p1 = pnand %p831_p11, %p1183_p10  ;;  %s834_s18 = sshll.u32 %s908_s25, 4  ;;  %s835_s18 = int_to_ptr.vmem [resolvable:$false] %s834_s18 }
  0x5e   : > { %429 = vmatprep.subr.bf16.mxu0 %v907_v0  ;;  %v338_v18 = vsel %vm329_vm1, %v632_v17, 0.0  ;;  %v466_v20 = vld [vmem:[#allocation7] sm:$0xff]  ;;  %s836_s29 = scalar_lea.vmem %s835_s18, 512  ;;  %p837_p6 = scmp.lt.s32.totalorder %s1114_s10, %s835_s18 }
  0x5f   : > { %v648_v43 = vld [vmem:[%s1161_s4] ss:$0 sm:$0xff]  ;;  %p833_p2 = pneg %p832_p1  ;;  %p838_p12 = scmp.lt.s32.totalorder %s836_s29, %s830_s27 }
  0x60   : > { %v649_v45 = vld [vmem:[%s1162_s5] ss:$0 sm:$0xff] }
  0x61   : > { %430 = vmatpush1.bf16.msra.mxu0 %v733_v3  ;;  %p839_p3 = por %p838_p12, %p837_p6 }
  0x62   : > { %431 = vmatprep.subr.bf16.mxu0 %v907_v0 }
  0x63   : > { %p840_p9 = pnand %p839_p3, %p833_p2 }
  0x65   : > { %432 = vmatpush1.bf16.msra.mxu0 %v734_v4 }
  0x66   : > { %433 = vmatprep.subr.bf16.mxu0 %v907_v0 }
  0x69   : > { %434 = vmatpush1.bf16.msra.mxu0 %v735_v6 }
  0x6a   : > { %435 = vmatprep.subr.bf16.mxu0 %v907_v0 }
  0x6d   : > { %436 = vmatpush1.bf16.msra.mxu0 %v736_v7 }
  0x6e   : > { %437 = vmatprep.subr.bf16.mxu0 %v907_v0 }
  0x71   : > { %438 = vmatpush1.bf16.msra.mxu0 %v737_v8 }
  0x72   : > { %439 = vmatprep.subr.bf16.mxu0 %v907_v0 }
  0x75   : > { %440 = vmatpush1.bf16.msra.mxu0 %v738_v9 }
  0x76   : > { %449 = vmatprep.subr.bf16.mxu0 %v907_v0 }
  0x79   : > { %450 = vmatpush2.bf16.msra.mxu0 %v739_v10 }
  0x7a   : > { %451 = vmatprep.subr.bf16.mxu0 %v907_v0 }
  0x7d   : > { %452 = vmatpush2.bf16.msra.mxu0 %v740_v11 }
  0x7e   : > { %453 = vmatprep.subr.bf16.mxu0 %v907_v0 }
  0x81   : > { %454 = vmatpush2.bf16.msra.mxu0 %v741_v12 }
  0x82   : > { %455 = vmatprep.subr.bf16.mxu0 %v907_v0 }
  0x85   : > { %456 = vmatpush2.bf16.msra.mxu0 %v742_v13 }
  0x88   : > { %458 = vmatmul.mubr.bf16.vlgmr.msra.gmra.mxu0 %v743_v14 }
 0x148   : > { %v459_v19 = vpop.f32.mrf.mxu0 }
 0x149   : > { %v460_v21 = vadd.f32 %v459_v19, %v338_v18 }
 0x14a   : > { %v461_v22 = vpop.f32.mrf.mxu0 }
 0x14b   : > { %v468_v23 = vadd.f32 %v466_v20, %v460_v21 }
 0x14c   : > { %v462_v24 = vpop.f32.mrf.mxu0 }
 0x14d   : > { %472 = vadd.xlane.f32.xlu0 %v468_v23  ;;  %v469_v27 = vadd.f32 %v467_v25, %v462_v24 }
 0x14e   : > { %v464_v26 = vpop.f32.mrf.mxu0 }
 0x151   : > { %474 = vadd.xlane.f32.xlu0 %v469_v27 }
 0x1d6   : > { %v473_v28 = vpop.xlane.xlu0 %472 }
 0x1d7   : > { %v477_v29 = vmul.f32 0.0078125, %v473_v28 }
 0x1d9   : > { %v479_v30 = vsub.f32 %v468_v23, %v477_v29 }
 0x1da   : > { %v475_v31 = vpop.xlane.xlu0 %474 }
 0x1db   : > { %v478_v32 = vmul.f32 0.0078125, %v475_v31  ;;  %v481_v33 = vmul.f32 %v479_v30, %v479_v30 }
 0x1dd   : > { %v480_v34 = vsub.f32 %v469_v27, %v478_v32  ;;  %483 = vadd.xlane.f32.xlu1 %v481_v33 }
 0x1df   : > { %v482_v35 = vmul.f32 %v480_v34, %v480_v34 }
 0x1e1   : > { %485 = vadd.xlane.f32.xlu1 %v482_v35 }
 0x266   : > { %v484_v36 = vpop.xlane.xlu1 %483 }
 0x267   : > { %v487_v37 = vmul.f32 0.0078125, %v484_v36 }
 0x269   : > { %v489_v38 = vadd.f32 1e-05, %v487_v37 }
 0x26a   : > { %v486_v39 = vpop.xlane.xlu1 %485 }
 0x26b   : > { %746 = vrsqrt.f32 %v489_v38  ;;  %v488_v40 = vmul.f32 0.0078125, %v486_v39 }
 0x26d   : > { %v490_v41 = vadd.f32 1e-05, %v488_v40 }
 0x26f   : > { %748 = vrsqrt.f32 %v490_v41 }
 0x278   : > { %v747_v42 = vpop.eup %746 }
 0x279   : > { %v493_v44 = vmul.f32 %v747_v42, %v479_v30 }
 0x27b   : > { %v501_v46 = vmul.f32 %v648_v43, %v493_v44 }
 0x27c   : > { %v749_v47 = vpop.eup %748 }
 0x27d   : > { %v509_v48 = vadd.f32 %v649_v45, %v501_v46  ;;  %v494_v49 = vmul.f32 %v749_v47, %v480_v34 }
 0x27f   : > { %v502_v50 = vmul.f32 %v648_v43, %v494_v49  ;;  %511 = vst [vmem:[%s298_s11] sm:$0xff] %v509_v48 }
 0x281   : > { %v510_v51 = vadd.f32 %v649_v45, %v502_v50 }
 0x283   : > { %512 = vst [vmem:[%s298_s11 + $0x8] sm:$0xff] %v510_v51 }
 0x284   : > { %843 = shalt.err (!%p840_p9)
}
 0x285   : > { %s844_s15 = scalar_lea.hbm %s1112_s12, 256  ;;  %s848_s14 = scalar_lea.hbm %s1163_s6, 512 }
 0x286   : > { %p845_p13 = scmp.ne.s32.totalorder %s1112_s12, %s844_s15  ;;  %p849_p4 = scmp.lt.s32.totalorder %s1112_s12, %s1163_s6 }
 0x287   : > { %p850_p8 = scmp.lt.s32.totalorder %s848_s14, %s844_s15 }
 0x288   : > { %p846_p5 = pnand %p845_p13, %p1183_p10 }
 0x289   : > { %p851_p7 = por %p850_p8, %p849_p4 }
 0x28a   : > { %p847_p0 = pneg %p846_p5 }
 0x28c   : > { %p852_p11 = pnand %p851_p7, %p847_p0 }
 0x28e   : > { %855 = shalt.err (!%p852_p11)
}
 0x28f   : > { %s909_s7 = smov 128   ;;  %s910_s13 = smov 8  }
 0x290   : > { %667 = dma.vmem_to_hbm [thread:$0]  (%p1183_p10), %s1114_s10, 256, %s1112_s12, %s514_s20, %s909_s7, %s909_s7, %s910_s13  }
 0x291 PF: > { %s542_s27 = sand.u32 1, %s886_s21   ;;  %p1184_p1 = scmp.ne.s32.totalorder %s1171_s28, 0 }
 0x292   : > { %p1185_p2 = scmp.ge.s32.totalorder %s898_s24, 2  ;;  %s543_s25 = scalar_lea.sflag [#allocation4], %s542_s27 }
 0x294   : > { %p681_p6 = pnand %p1185_p2, %p1184_p1 }
 0x296   : > { %p682_p12 = pneg %p681_p6 }
 0x298   : > { %881 = dma.done.wait (%p682_p12), %s543_s25, 256  }
 0x299   : > { %883 = vsyncadd (%p682_p12), %s543_s25, 4294967040  ;;  %p20_p3 = scmp.ge.s32.totalorder %s1021_s26, 4   ;;  %s1186_s21 = smov %s890_s22 }
 0x29a   : > { %s1187_s22 = smov %s894_s23  ;;  %s1188_s23 = smov %s1030_s9 }
 0x29b   : > { %s1189_s24 = smov %s1021_s26  ;;  %22 = sbr.rel (!%p20_p3) target bundleno = 6 (0x6), region = 97 }
 0x2a0   :  { %548 = vsyncpa [#allocation3], 1 }
 0x2a1   :  { %550 = vsyncpa [#allocation3 + $0x1], 1 }
 0x2a2   :  { %551 = vsyncpa [#allocation6], 1 }
 0x2a3   :  { %552 = vsyncpa [#allocation4], 1 }
 0x2a4   :  { %554 = vsyncpa [#allocation4 + $0x1], 1 }

</bundles_post_ra>
